<compile_context>
chip_gen: v6e
topology: v6e:2x2x1
jax: 0.10.0
libtpu: 0.0.40
codegen_flags: <defaults>
</compile_context>

<pallas_src>
import functools

import jax
import jax.numpy as jnp
from jax.experimental import pallas as pl
from jax.experimental.pallas import tpu as pltpu

HIDDEN = 128           # hidden width fixed by the PyTorch module
_BF16_SUBLANE = 16     # bf16 sublane tile; keep packed-weight section offsets 16-aligned


def _round_up(x, m):
    return ((x + m - 1) // m) * m


def _dqn_kernel(x_ref, w_ref, b_ref, o_ref, *, in_pad, hidden):
    # Packed bf16 weights: rows [0:in_pad] = W1 (features zero-padded),
    # [in_pad : in_pad+hidden] = W2, [in_pad+hidden : in_pad+2*hidden] = W3 (out dim padded).
    w1 = w_ref[0:in_pad, :]
    w2 = w_ref[in_pad:in_pad + hidden, :]
    w3 = w_ref[in_pad + hidden:in_pad + 2 * hidden, :]
    b = b_ref[...]                        # (3, hidden) f32: rows = b1, b2, b3 (padded)

    x = x_ref[...].astype(jnp.bfloat16)   # (TB, in_pad); cast only for the MXU operand

    h1 = jnp.dot(x, w1, preferred_element_type=jnp.float32)
    h1 = jnp.maximum(h1 + b[0:1, :], 0.0)                       # f32 elementwise path

    h2 = jnp.dot(h1.astype(jnp.bfloat16), w2, preferred_element_type=jnp.float32)
    h2 = jnp.maximum(h2 + b[1:2, :], 0.0)

    out = jnp.dot(h2.astype(jnp.bfloat16), w3, preferred_element_type=jnp.float32)
    o_ref[...] = (out + b[2:3, :]).astype(o_ref.dtype)


def pack_dqn_params(params, state_size, action_size):
    """Pack (w1,b1,w2,b2,w3,b3) into one bf16 weight buffer and one f32 bias buffer."""
    assert action_size <= HIDDEN, "action_size > 128 not supported by this packing"
    in_pad = _round_up(max(state_size, _BF16_SUBLANE), _BF16_SUBLANE)
    w1 = jnp.zeros((in_pad, HIDDEN), jnp.float32).at[:state_size, :].set(params["w1"])
    w2 = params["w2"].astype(jnp.float32)
    w3 = jnp.zeros((HIDDEN, HIDDEN), jnp.float32).at[:, :action_size].set(params["w3"])
    w_pack = jnp.concatenate([w1, w2, w3], axis=0).astype(jnp.bfloat16)   # (in_pad+256, 128)

    b_pack = jnp.zeros((3, HIDDEN), jnp.float32)
    b_pack = b_pack.at[0, :].set(params["b1"].reshape(-1))
    b_pack = b_pack.at[1, :].set(params["b2"].reshape(-1))
    b_pack = b_pack.at[2, :action_size].set(params["b3"].reshape(-1))
    return w_pack, b_pack


@functools.partial(jax.jit, static_argnames=("action_size",))
def dqn_forward(x, w_pack, b_pack, *, action_size):
    """x: (B, state_size) f32.  Returns (B, action_size) f32 Q-values."""
    B, state_size = x.shape
    in_pad = w_pack.shape[0] - 2 * HIDDEN

    # Batch tile: fill the MXU M dimension when the batch is large, stay minimal otherwise.
    if B >= 256:
        tb = 256
    elif B >= 128:
        tb = 128
    else:
        tb = _round_up(max(B, 8), 8)
    b_padded = _round_up(B, tb)

    # Zero-pad batch to a tile multiple and features up to the packed-W1 row count.
    x_p = jnp.zeros((b_padded, in_pad), jnp.float32).at[:B, :state_size].set(x)

    kernel = functools.partial(_dqn_kernel, in_pad=in_pad, hidden=HIDDEN)
    out = pl.pallas_call(
        kernel,
        out_shape=jax.ShapeDtypeStruct((b_padded, HIDDEN), jnp.float32),
        grid=(b_padded // tb,),
        in_specs=[
            pl.BlockSpec((tb, in_pad), lambda i: (i, 0)),        # x: tiled over batch
            pl.BlockSpec(w_pack.shape, lambda i: (0, 0)),        # packed weights: VMEM-resident
            pl.BlockSpec(b_pack.shape, lambda i: (0, 0)),        # packed biases: VMEM-resident
        ],
        out_specs=pl.BlockSpec((tb, HIDDEN), lambda i: (i, 0)),  # lane-dense (TB,128) output
        compiler_params=pltpu.CompilerParams(
            dimension_semantics=("parallel",),     # shard batch tiles across TCs on v7x
            vmem_limit_bytes=4 * 1024 * 1024,      # actual footprint is well under 1 MiB
        ),
    )(x_p, w_pack, b_pack)

    return out[:B, :action_size]


def init_dqn_params(key, state_size, action_size, hidden=HIDDEN):
    """Deterministic synthetic parameters; shapes mirror the PyTorch module (stored (in,out))."""
    k1, k2, k3, k4, k5, k6 = jax.random.split(key, 6)
    w1 = jax.random.normal(k1, (state_size, hidden), jnp.float32) / jnp.sqrt(state_size)
    b1 = jax.random.normal(k2, (hidden,), jnp.float32) * 0.01
    w2 = jax.random.normal(k3, (hidden, hidden), jnp.float32) / jnp.sqrt(hidden)
    b2 = jax.random.normal(k4, (hidden,), jnp.float32) * 0.01
    w3 = jax.random.normal(k5, (hidden, action_size), jnp.float32) / jnp.sqrt(hidden)
    b3 = jax.random.normal(k6, (action_size,), jnp.float32) * 0.01
    return dict(w1=w1, b1=b1, w2=w2, b2=b2, w3=w3, b3=b3)


def dqn_reference(x, p):
    """Pure-JAX reference with the same bf16-weight / f32-accumulate numerics as the kernel."""
    def mm(a, w):
        return jnp.dot(a.astype(jnp.bfloat16), w.astype(jnp.bfloat16),
                       preferred_element_type=jnp.float32)
    h1 = jnp.maximum(mm(x, p["w1"]) + p["b1"][None, :], 0.0)
    h2 = jnp.maximum(mm(h1, p["w2"]) + p["b2"][None, :], 0.0)
    return mm(h2, p["w3"]) + p["b3"][None, :]


if __name__ == "__main__":
    key = jax.random.PRNGKey(0)
    k_param, k_x = jax.random.split(key)

    batch = 200          # not a tile multiple: exercises batch padding + a 2-step grid
    state_size = 4       # e.g. CartPole observation dim
    action_size = 2      # e.g. CartPole action dim

    params = init_dqn_params(k_param, state_size, action_size)
    x = jax.random.normal(k_x, (batch, state_size), jnp.float32)

    w_pack, b_pack = pack_dqn_params(params, state_size, action_size)
    out = dqn_forward(x, w_pack, b_pack, action_size=action_size)
    out = jax.block_until_ready(out)

    ref = dqn_reference(x, params)
    assert out.shape == (batch, action_size)
    assert jnp.allclose(out, ref, atol=1e-3, rtol=1e-3), (
        "Pallas output mismatch vs reference "
        f"(max abs diff {float(jnp.max(jnp.abs(out - ref)))})")

    print("KERNEL_OK")
</pallas_src>

<mosaic_0001>
module attributes {stable_mosaic.version = 11 : i64} {
  func.func @_dqn_kernel(%arg0: i32, %arg1: memref<128x16xf32, #tpu.memory_space<vmem>>, %arg2: memref<272x128xbf16, #tpu.memory_space<vmem>>, %arg3: memref<3x128xf32, #tpu.memory_space<vmem>>, %arg4: memref<128x128xf32, #tpu.memory_space<vmem>>) attributes {dimension_semantics = [#tpu.dimension_semantics<parallel>], iteration_bounds = array<i64: 2>, scalar_prefetch = 0 : i64, scratch_operands = 0 : i64, tpu.core_type = #tpu.core_type<tc>, window_params = [{transform_indices = @transform_0, window_bounds = array<i64: 128, 16>}, {pipeline_mode = #tpu.pipeline_mode<synchronous>, transform_indices = @transform_1, window_bounds = array<i64: 272, 128>}, {pipeline_mode = #tpu.pipeline_mode<synchronous>, transform_indices = @transform_2, window_bounds = array<i64: 3, 128>}, {transform_indices = @transform_3, window_bounds = array<i64: 128, 128>}]} {
    %c0 = arith.constant 0 : index
    %c0_0 = arith.constant 0 : index
    %0 = vector.load %arg2[%c0, %c0_0] : memref<272x128xbf16, #tpu.memory_space<vmem>>, vector<16x128xbf16>
    %c16 = arith.constant 16 : index
    %c0_1 = arith.constant 0 : index
    %1 = vector.load %arg2[%c16, %c0_1] : memref<272x128xbf16, #tpu.memory_space<vmem>>, vector<128x128xbf16>
    %c144 = arith.constant 144 : index
    %c0_2 = arith.constant 0 : index
    %2 = vector.load %arg2[%c144, %c0_2] : memref<272x128xbf16, #tpu.memory_space<vmem>>, vector<128x128xbf16>
    %c0_3 = arith.constant 0 : index
    %c0_4 = arith.constant 0 : index
    %3 = vector.load %arg3[%c0_3, %c0_4] : memref<3x128xf32, #tpu.memory_space<vmem>>, vector<3x128xf32>
    %c0_5 = arith.constant 0 : index
    %c0_6 = arith.constant 0 : index
    %4 = vector.load %arg1[%c0_5, %c0_6] : memref<128x16xf32, #tpu.memory_space<vmem>>, vector<128x16xf32>
    %5 = arith.truncf %4 : vector<128x16xf32> to vector<128x16xbf16>
    %cst = arith.constant dense<0.000000e+00> : vector<128x128xf32>
    %6 = tpu.matmul %5, %0, %cst {dimension_numbers = #tpu.dot_dimension_numbers<[1], [0], [0], [1], [0, 0, 1, 1], [], []>} : vector<128x16xbf16>, vector<16x128xbf16>, vector<128x128xf32> -> vector<128x128xf32>
    %7 = vector.extract_strided_slice %3 {offsets = [0, 0], sizes = [1, 128], strides = [1, 1]} : vector<3x128xf32> to vector<1x128xf32>
    %8 = vector.broadcast %7 : vector<1x128xf32> to vector<128x128xf32>
    %9 = arith.addf %6, %8 : vector<128x128xf32>
    %cst_7 = arith.constant 0.000000e+00 : f32
    %10 = vector.broadcast %cst_7 : f32 to vector<128x128xf32>
    %11 = arith.maximumf %9, %10 : vector<128x128xf32>
    %12 = arith.truncf %11 : vector<128x128xf32> to vector<128x128xbf16>
    %cst_8 = arith.constant dense<0.000000e+00> : vector<128x128xf32>
    %13 = tpu.matmul %12, %1, %cst_8 {dimension_numbers = #tpu.dot_dimension_numbers<[1], [0], [0], [1], [0, 0, 1, 1], [], []>} : vector<128x128xbf16>, vector<128x128xbf16>, vector<128x128xf32> -> vector<128x128xf32>
    %14 = vector.extract_strided_slice %3 {offsets = [1, 0], sizes = [1, 128], strides = [1, 1]} : vector<3x128xf32> to vector<1x128xf32>
    %15 = vector.broadcast %14 : vector<1x128xf32> to vector<128x128xf32>
    %16 = arith.addf %13, %15 : vector<128x128xf32>
    %cst_9 = arith.constant 0.000000e+00 : f32
    %17 = vector.broadcast %cst_9 : f32 to vector<128x128xf32>
    %18 = arith.maximumf %16, %17 : vector<128x128xf32>
    %19 = arith.truncf %18 : vector<128x128xf32> to vector<128x128xbf16>
    %cst_10 = arith.constant dense<0.000000e+00> : vector<128x128xf32>
    %20 = tpu.matmul %19, %2, %cst_10 {dimension_numbers = #tpu.dot_dimension_numbers<[1], [0], [0], [1], [0, 0, 1, 1], [], []>} : vector<128x128xbf16>, vector<128x128xbf16>, vector<128x128xf32> -> vector<128x128xf32>
    %21 = vector.extract_strided_slice %3 {offsets = [2, 0], sizes = [1, 128], strides = [1, 1]} : vector<3x128xf32> to vector<1x128xf32>
    %22 = vector.broadcast %21 : vector<1x128xf32> to vector<128x128xf32>
    %23 = arith.addf %20, %22 : vector<128x128xf32>
    %c0_11 = arith.constant 0 : index
    %c0_12 = arith.constant 0 : index
    %24 = vector.load %arg4[%c0_11, %c0_12] : memref<128x128xf32, #tpu.memory_space<vmem>>, vector<128x128xf32>
    tpu.vector_store %arg4[%c0_11, %c0_12], %23 {strides = array<i32>} : memref<128x128xf32, #tpu.memory_space<vmem>>, vector<128x128xf32>,
    return
  }
  func.func @transform_0(%arg0: i32) -> (i32, i32) {
    %c0_i32 = arith.constant 0 : i32
    %c0_i32_0 = arith.constant 0 : i32
    return %arg0, %c0_i32 : i32, i32
  }
  func.func @transform_1(%arg0: i32) -> (i32, i32) {
    %c0_i32 = arith.constant 0 : i32
    %c0_i32_0 = arith.constant 0 : i32
    %c0_i32_1 = arith.constant 0 : i32
    return %c0_i32, %c0_i32_0 : i32, i32
  }
  func.func @transform_2(%arg0: i32) -> (i32, i32) {
    %c0_i32 = arith.constant 0 : i32
    %c0_i32_0 = arith.constant 0 : i32
    %c0_i32_1 = arith.constant 0 : i32
    return %c0_i32, %c0_i32_0 : i32, i32
  }
  func.func @transform_3(%arg0: i32) -> (i32, i32) {
    %c0_i32 = arith.constant 0 : i32
    %c0_i32_0 = arith.constant 0 : i32
    return %arg0, %c0_i32 : i32, i32
  }
}

</mosaic_0001>

<bundles_post_ra>
// kernel: dqn_forward.1
= control target key start
LH: loop header
LB: loop body
LE: loop exit
PB: predicated region body
PF: predicated region fallthrough
CT: control target
= control target key end

     0   :  { %s996_s12 = smov 0   ;;  %s1128_s0 = inlined_call_operand.vmem [shape: f32[256,16], index: 0, kind: input, shape index: {}]   ;;  %s1129_s1 = inlined_call_operand.vmem [shape: bf16[272,128], index: 1, kind: input, shape index: {}]   ;;  %s1130_s2 = inlined_call_operand.vmem [shape: f32[3,128], index: 2, kind: input, shape index: {}]   ;;  %s1131_s3 = inlined_call_operand.vmem [shape: f32[256,128], index: 3, kind: output, shape index: {}]  }
   0x1 LB: > { %s784_s13 = sadd.s32 4294967295, %s974_s12   ;;  %p788_p0 = scmp.ge.s32.totalorder %s974_s12, 1  ;;  %s974_s12 = sphi %s996_s12, %s13_s12  }
   0x2   : > { %p138_p1 = scmp.lt.s32.totalorder %s974_s12, 3 }
   0x4   : > { %p139_p2 = pnand %p788_p0, %p138_p1 }
   0x5   : > { %s789_s16 = sshll.u32 (!%p139_p2), %s784_s13, 4 }
   0x6   : > { %142 = sbr.rel (%p139_p2) target bundleno = 656 (0x290), region = 32  ;;  %p163_p3 = scmp.lt.s32.totalorder (!%p139_p2), %s789_s16, 31 }
   0xb   : > { %v951_v0 = vld [vmem:[%s1129_s1] sm:$0xff]   ;;  %s1133_s16 = smov (!%p163_p3, %s789_s16), 31  ;;  %v953_v2 = vld [vmem:[%s1129_s1 + $0x38] sm:$0xff]   ;;  %v954_v3 = vld [vmem:[%s1129_s1 + $0x30] sm:$0xff]   ;;  %vm244_vm0 = vcmask 130048   ;;  %v234_v38 = vlaneseq }
   0xc   : > { %861 = vmatprep.subr.bf16.mxu0 %v951_v0  ;;  %v952_v1 = vld [vmem:[%s1129_s1 + $0x40] sm:$0xff]   ;;  %s790_s21 = sshll.u32 %s1133_s16, 3  ;;  %v955_v13 = vld [vmem:[%s1129_s1 + $0x28] sm:$0xff]   ;;  %v957_v30 = vld [vmem:[%s1129_s1 + $0x18] sm:$0xff]  }
   0xd   : > { %862 = vmatpush3.bf16.msra.mxu0 %v951_v0  ;;  %879 = vmatprep.subr.bf16.mxu1 %v952_v1  ;;  %s1021_s24 = scalar_lea.vmem %s1128_s0, %s790_s21  ;;  %v956_v18 = vld [vmem:[%s1129_s1 + $0x20] sm:$0xff]   ;;  %v958_v31 = vld [vmem:[%s1129_s1 + $0x10] sm:$0xff]   ;;  %v959_v32 = vld [vmem:[%s1129_s1 + $0x8] sm:$0xff]   ;;  %v1080_v39 = vshrl.u32 %v234_v38, 7  ;;  %s1107_s6 = scalar_lea.vmem %s1131_s3, %s790_s21 }
   0xe   : > { %880 = vmatpush3.bf16.msra.mxu1 %v952_v1  ;;  %v210_v4 = vld [vmem:[%s1021_s24] sm:$0xff]  ;;  %v211_v5 = vld [vmem:[%s1021_s24 + $0x8] sm:$0xff]  ;;  %v212_v6 = vld [vmem:[%s1021_s24 + $0x10] sm:$0xff] }
   0xf   : > { %881 = vmatprep.subr.bf16.mxu1 %v953_v2  ;;  %v226_v7 = vpack.c.bf16 %v211_v5, %v210_v4  ;;  %v213_v8 = vld [vmem:[%s1021_s24 + $0x18] sm:$0xff]  ;;  %v214_v9 = vld [vmem:[%s1021_s24 + $0x20] sm:$0xff]  ;;  %v215_v10 = vld [vmem:[%s1021_s24 + $0x28] sm:$0xff]  ;;  %v236_v40 = vsub.s32 0, %v1080_v39  ;;  %v392_v38 = vsub.s32 1, %v1080_v39 }
  0x10   : > { %v227_v11 = vpack.c.bf16 %v213_v8, %v212_v6  ;;  %v228_v12 = vpack.c.bf16 %v215_v10, %v214_v9  ;;  %v216_v14 = vld [vmem:[%s1021_s24 + $0x30] sm:$0xff]  ;;  %v217_v15 = vld [vmem:[%s1021_s24 + $0x38] sm:$0xff]  ;;  %v218_v16 = vld [vmem:[%s1021_s24 + $0x40] sm:$0xff] }
  0x11   : > { %863 = vmatprep.mubr.msk.bf16.mxu0 %vm244_vm0, %v226_v7  ;;  %v219_v17 = vld [vmem:[%s1021_s24 + $0x48] sm:$0xff]  ;;  %v229_v19 = vpack.c.bf16 %v217_v15, %v216_v14  ;;  %v220_v21 = vld [vmem:[%s1021_s24 + $0x50] sm:$0xff]  ;;  %v221_v22 = vld [vmem:[%s1021_s24 + $0x58] sm:$0xff] }
  0x12   : > { %882 = vmatpush3.bf16.msra.mxu1 %v953_v2  ;;  %864 = vmatmul.mubr.msk.bf16.vlgmr.msra.gmra.mxu0 %vm244_vm0, %v227_v11  ;;  %v230_v20 = vpack.c.bf16 %v219_v17, %v218_v16  ;;  %v222_v23 = vld [vmem:[%s1021_s24 + $0x60] sm:$0xff]  ;;  %v223_v24 = vld [vmem:[%s1021_s24 + $0x68] sm:$0xff]  ;;  %v231_v25 = vpack.c.bf16 %v221_v22, %v220_v21  ;;  %v224_v27 = vld [vmem:[%s1021_s24 + $0x70] sm:$0xff] }
  0x13   : > { %883 = vmatprep.subr.bf16.mxu1 %v954_v3  ;;  %867 = vmatprep.mubr.msk.bf16.mxu0 %vm244_vm0, %v228_v12  ;;  %v232_v26 = vpack.c.bf16 %v223_v24, %v222_v23  ;;  %v225_v28 = vld [vmem:[%s1021_s24 + $0x78] sm:$0xff]  ;;  %v960_v33 = vld [vmem:[%s1129_s1 + $0x80] sm:$0xff]   ;;  %v962_v35 = vld [vmem:[%s1129_s1 + $0x70] sm:$0xff]  }
  0x14   : > { %v233_v29 = vpack.c.bf16 %v225_v28, %v224_v27  ;;  %v961_v34 = vld [vmem:[%s1129_s1 + $0x78] sm:$0xff]   ;;  %911 = vmatprep.subr.bf16.mxu0 %v960_v33  ;;  %v963_v36 = vld [vmem:[%s1129_s1 + $0x68] sm:$0xff]   ;;  %v964_v37 = vld [vmem:[%s1129_s1 + $0x60] sm:$0xff]  }
  0x15   : > { %912 = vmatpush3.bf16.msra.mxu0 %v960_v33  ;;  %v1086_v41 = vld [vmem:[%s1130_s2] sm:$0x7] }
  0x16   : > { %884 = vmatpush3.bf16.msra.mxu1 %v954_v3  ;;  %913 = vmatprep.subr.bf16.mxu0 %v961_v34  ;;  %v237_v43 = vrot.slane %v1086_v41, %v236_v40 }
  0x17   : > { %885 = vmatprep.subr.bf16.mxu1 %v955_v13 }
  0x19   : > { %914 = vmatpush3.bf16.msra.mxu0 %v961_v34 }
  0x1a   : > { %886 = vmatpush3.bf16.msra.mxu1 %v955_v13  ;;  %868 = vmatmul.mubr.msk.bf16.gmra.mxu0 %vm244_vm0, %v229_v19 }
  0x1b   : > { %887 = vmatprep.subr.bf16.mxu1 %v956_v18  ;;  %871 = vmatprep.mubr.msk.bf16.mxu0 %vm244_vm0, %v230_v20 }
  0x1c   : > { %915 = vmatprep.subr.bf16.mxu0 %v962_v35 }
  0x1d   : > { %916 = vmatpush3.bf16.msra.mxu0 %v962_v35  ;;  %v965_v35 = vld [vmem:[%s1129_s1 + $0x58] sm:$0xff]  }
  0x1e   : > { %888 = vmatpush3.bf16.msra.mxu1 %v956_v18  ;;  %917 = vmatprep.subr.bf16.mxu0 %v963_v36 }
  0x1f   : > { %889 = vmatprep.subr.bf16.mxu1 %v957_v30 }
  0x21   : > { %918 = vmatpush3.bf16.msra.mxu0 %v963_v36  ;;  %v966_v36 = vld [vmem:[%s1129_s1 + $0x50] sm:$0xff]  }
  0x22   : > { %872 = vmatmul.mubr.msk.bf16.gmra.mxu0 %vm244_vm0, %v231_v25  ;;  %890 = vmatpush3.bf16.msra.mxu1 %v957_v30 }
  0x23   : > { %875 = vmatprep.mubr.msk.bf16.mxu0 %vm244_vm0, %v232_v26  ;;  %891 = vmatprep.subr.bf16.mxu1 %v958_v31 }
  0x24   : > { %919 = vmatprep.subr.bf16.mxu0 %v964_v37 }
  0x25   : > { %920 = vmatpush3.bf16.msra.mxu0 %v964_v37  ;;  %v967_v37 = vld [vmem:[%s1129_s1 + $0x48] sm:$0xff]  }
  0x26   : > { %892 = vmatpush3.bf16.msra.mxu1 %v958_v31  ;;  %921 = vmatprep.subr.bf16.mxu0 %v965_v35 }
  0x27   : > { %893 = vmatprep.subr.bf16.mxu1 %v959_v32 }
  0x29   : > { %922 = vmatpush3.bf16.msra.mxu0 %v965_v35 }
  0x2a   : > { %876 = vmatmul.mubr.msk.bf16.gmra.mxu0 %vm244_vm0, %v233_v29  ;;  %894 = vmatpush3.bf16.msra.mxu1 %v959_v32 }
  0x2b   : > { %923 = vmatprep.subr.bf16.mxu0 %v966_v36 }
  0x2d   : > { %924 = vmatpush3.bf16.msra.mxu0 %v966_v36 }
  0x2e   : > { %925 = vmatprep.subr.bf16.mxu0 %v967_v37 }
  0x31   : > { %926 = vmatpush3.bf16.msra.mxu0 %v967_v37 }
  0xd2   : > { %v865_v42 = vpop.f32.mrf.mxu0 }
  0xd3   : > { %v312_v48 = vadd.f32 %v865_v42, %v237_v43  ;;  %v393_v42 = vrot.slane %v1086_v41, %v392_v38 }
  0xd4   : > { %v303_v44 = vpop.f32.mrf.mxu0 }
  0xd5   : > { %v304_v46 = vadd.f32 %v303_v44, %v237_v43  ;;  %v368_v55 = vmax.f32 %v312_v48, 0.0 }
  0xd6   : > { %v866_v45 = vpop.f32.mrf.mxu0 }
  0xd7   : > { %v315_v47 = vadd.f32 %v866_v45, %v237_v43  ;;  %v366_v53 = vmax.f32 %v304_v46, 0.0 }
  0xd8   : > { %v306_v49 = vpop.f32.mrf.mxu0 }
  0xd9   : > { %v307_v50 = vadd.f32 %v306_v49, %v237_v43  ;;  %v369_v51 = vmax.f32 %v315_v47, 0.0 }
  0xda   : > { %v869_v52 = vpop.f32.mrf.mxu0 }
  0xdb   : > { %v367_v54 = vmax.f32 %v307_v50, 0.0  ;;  %v383_v58 = vpack.c.bf16 %v369_v51, %v368_v55  ;;  %v328_v62 = vadd.f32 %v869_v52, %v237_v43 }
  0xdc   : > { %v319_v56 = vpop.f32.mrf.mxu0 }
  0xdd   : > { %v382_v57 = vpack.c.bf16 %v367_v54, %v366_v53  ;;  %v320_v60 = vadd.f32 %v319_v56, %v237_v43  ;;  %v372_v5 = vmax.f32 %v328_v62, 0.0 }
  0xde   : > { %v870_v59 = vpop.f32.mrf.mxu0 }
  0xdf   : > { %v331_v61 = vadd.f32 %v870_v59, %v237_v43  ;;  %895 = vmatprep.mubr.bf16.mxu1 %v382_v57  ;;  %v370_v3 = vmax.f32 %v320_v60, 0.0 }
  0xe0   : > { %v322_v63 = vpop.f32.mrf.mxu0  ;;  %896 = vmatmul.mubr.bf16.vlgmr.msra.gmra.mxu1 %v383_v58 }
  0xe1   : > { %v323_v0 = vadd.f32 %v322_v63, %v237_v43  ;;  %v373_v1 = vmax.f32 %v331_v61, 0.0 }
  0xe2   : > { %v873_v2 = vpop.f32.mrf.mxu0 }
  0xe3   : > { %v371_v4 = vmax.f32 %v323_v0, 0.0  ;;  %v385_v8 = vpack.c.bf16 %v373_v1, %v372_v5  ;;  %v344_v12 = vadd.f32 %v873_v2, %v237_v43 }
  0xe4   : > { %v335_v6 = vpop.f32.mrf.mxu0 }
  0xe5   : > { %v384_v7 = vpack.c.bf16 %v371_v4, %v370_v3  ;;  %v336_v10 = vadd.f32 %v335_v6, %v237_v43  ;;  %v376_v19 = vmax.f32 %v344_v12, 0.0 }
  0xe6   : > { %v874_v9 = vpop.f32.mrf.mxu0 }
  0xe7   : > { %v347_v11 = vadd.f32 %v874_v9, %v237_v43  ;;  %899 = vmatprep.mubr.bf16.mxu1 %v384_v7  ;;  %v374_v17 = vmax.f32 %v336_v10, 0.0 }
  0xe8   : > { %v338_v13 = vpop.f32.mrf.mxu0  ;;  %900 = vmatmul.mubr.bf16.gmra.mxu1 %v385_v8 }
  0xe9   : > { %v339_v14 = vadd.f32 %v338_v13, %v237_v43  ;;  %v377_v15 = vmax.f32 %v347_v11, 0.0 }
  0xea   : > { %v877_v16 = vpop.f32.mrf.mxu0 }
  0xeb   : > { %v375_v18 = vmax.f32 %v339_v14, 0.0  ;;  %v387_v22 = vpack.c.bf16 %v377_v15, %v376_v19  ;;  %v360_v26 = vadd.f32 %v877_v16, %v237_v43 }
  0xec   : > { %v351_v20 = vpop.f32.mrf.mxu0 }
  0xed   : > { %v386_v21 = vpack.c.bf16 %v375_v18, %v374_v17  ;;  %v352_v24 = vadd.f32 %v351_v20, %v237_v43  ;;  %v380_v32 = vmax.f32 %v360_v26, 0.0 }
  0xee   : > { %v878_v23 = vpop.f32.mrf.mxu0 }
  0xef   : > { %v363_v25 = vadd.f32 %v878_v23, %v237_v43  ;;  %903 = vmatprep.mubr.bf16.mxu1 %v386_v21  ;;  %v378_v30 = vmax.f32 %v352_v24, 0.0 }
  0xf0   : > { %v354_v27 = vpop.f32.mrf.mxu0  ;;  %904 = vmatmul.mubr.bf16.gmra.mxu1 %v387_v22 }
  0xf1   : > { %v355_v28 = vadd.f32 %v354_v27, %v237_v43  ;;  %v381_v29 = vmax.f32 %v363_v25, 0.0 }
  0xf3   : > { %v379_v31 = vmax.f32 %v355_v28, 0.0  ;;  %v389_v34 = vpack.c.bf16 %v381_v29, %v380_v32 }
  0xf5   : > { %v388_v33 = vpack.c.bf16 %v379_v31, %v378_v30 }
  0xf7   : > { %907 = vmatprep.mubr.bf16.mxu1 %v388_v33 }
  0xf8   : > { %908 = vmatmul.mubr.bf16.gmra.mxu1 %v389_v34  ;;  %v565_v34 = vsub.s32 2, %v1080_v39 }
  0xfa   : > { %v566_v35 = vrot.slane %v1086_v41, %v565_v34 }
 0x1a0   : > { %v897_v40 = vpop.f32.mrf.mxu1 }
 0x1a1   : > { %v485_v47 = vadd.f32 %v897_v40, %v393_v42 }
 0x1a2   : > { %v476_v43 = vpop.f32.mrf.mxu1 }
 0x1a3   : > { %v477_v45 = vadd.f32 %v476_v43, %v393_v42  ;;  %v541_v54 = vmax.f32 %v485_v47, 0.0 }
 0x1a4   : > { %v898_v44 = vpop.f32.mrf.mxu1 }
 0x1a5   : > { %v488_v46 = vadd.f32 %v898_v44, %v393_v42  ;;  %v539_v52 = vmax.f32 %v477_v45, 0.0 }
 0x1a6   : > { %v479_v48 = vpop.f32.mrf.mxu1 }
 0x1a7   : > { %v480_v49 = vadd.f32 %v479_v48, %v393_v42  ;;  %v542_v50 = vmax.f32 %v488_v46, 0.0 }
 0x1a8   : > { %v901_v51 = vpop.f32.mrf.mxu1 }
 0x1a9   : > { %v540_v53 = vmax.f32 %v480_v49, 0.0  ;;  %v556_v57 = vpack.c.bf16 %v542_v50, %v541_v54  ;;  %v501_v61 = vadd.f32 %v901_v51, %v393_v42 }
 0x1aa   : > { %v492_v55 = vpop.f32.mrf.mxu1 }
 0x1ab   : > { %v555_v56 = vpack.c.bf16 %v540_v53, %v539_v52  ;;  %v493_v59 = vadd.f32 %v492_v55, %v393_v42  ;;  %v545_v4 = vmax.f32 %v501_v61, 0.0 }
 0x1ac   : > { %v902_v58 = vpop.f32.mrf.mxu1 }
 0x1ad   : > { %v504_v60 = vadd.f32 %v902_v58, %v393_v42  ;;  %927 = vmatprep.mubr.bf16.mxu0 %v555_v56  ;;  %v543_v2 = vmax.f32 %v493_v59, 0.0 }
 0x1ae   : > { %v495_v62 = vpop.f32.mrf.mxu1  ;;  %928 = vmatmul.mubr.bf16.vlgmr.msra.gmra.mxu0 %v556_v57 }
 0x1af   : > { %v496_v63 = vadd.f32 %v495_v62, %v393_v42  ;;  %v546_v0 = vmax.f32 %v504_v60, 0.0 }
 0x1b0   : > { %v905_v1 = vpop.f32.mrf.mxu1 }
 0x1b1   : > { %v544_v3 = vmax.f32 %v496_v63, 0.0  ;;  %v558_v7 = vpack.c.bf16 %v546_v0, %v545_v4  ;;  %v517_v11 = vadd.f32 %v905_v1, %v393_v42 }
 0x1b2   : > { %v508_v5 = vpop.f32.mrf.mxu1 }
 0x1b3   : > { %v557_v6 = vpack.c.bf16 %v544_v3, %v543_v2  ;;  %v509_v9 = vadd.f32 %v508_v5, %v393_v42  ;;  %v549_v18 = vmax.f32 %v517_v11, 0.0 }
 0x1b4   : > { %v906_v8 = vpop.f32.mrf.mxu1 }
 0x1b5   : > { %v520_v10 = vadd.f32 %v906_v8, %v393_v42  ;;  %931 = vmatprep.mubr.bf16.mxu0 %v557_v6  ;;  %v547_v16 = vmax.f32 %v509_v9, 0.0 }
 0x1b6   : > { %v511_v12 = vpop.f32.mrf.mxu1  ;;  %932 = vmatmul.mubr.bf16.gmra.mxu0 %v558_v7 }
 0x1b7   : > { %v512_v13 = vadd.f32 %v511_v12, %v393_v42  ;;  %v550_v14 = vmax.f32 %v520_v10, 0.0 }
 0x1b8   : > { %v909_v15 = vpop.f32.mrf.mxu1 }
 0x1b9   : > { %v548_v17 = vmax.f32 %v512_v13, 0.0  ;;  %v560_v21 = vpack.c.bf16 %v550_v14, %v549_v18  ;;  %v533_v25 = vadd.f32 %v909_v15, %v393_v42 }
 0x1ba   : > { %v524_v19 = vpop.f32.mrf.mxu1 }
 0x1bb   : > { %v559_v20 = vpack.c.bf16 %v548_v17, %v547_v16  ;;  %v525_v23 = vadd.f32 %v524_v19, %v393_v42  ;;  %v553_v31 = vmax.f32 %v533_v25, 0.0 }
 0x1bc   : > { %v910_v22 = vpop.f32.mrf.mxu1 }
 0x1bd   : > { %v536_v24 = vadd.f32 %v910_v22, %v393_v42  ;;  %935 = vmatprep.mubr.bf16.mxu0 %v559_v20  ;;  %v551_v29 = vmax.f32 %v525_v23, 0.0 }
 0x1be   : > { %v527_v26 = vpop.f32.mrf.mxu1  ;;  %936 = vmatmul.mubr.bf16.gmra.mxu0 %v560_v21 }
 0x1bf   : > { %v528_v27 = vadd.f32 %v527_v26, %v393_v42  ;;  %v554_v28 = vmax.f32 %v536_v24, 0.0 }
 0x1c1   : > { %v552_v30 = vmax.f32 %v528_v27, 0.0  ;;  %v562_v33 = vpack.c.bf16 %v554_v28, %v553_v31 }
 0x1c3   : > { %v561_v32 = vpack.c.bf16 %v552_v30, %v551_v29 }
 0x1c5   : > { %939 = vmatprep.mubr.bf16.mxu0 %v561_v32 }
 0x1c6   : > { %940 = vmatmul.mubr.bf16.gmra.mxu0 %v562_v33 }
 0x26e   : > { %v929_v36 = vpop.f32.mrf.mxu0 }
 0x26f   : > { %v658_v37 = vadd.f32 %v929_v36, %v566_v35 }
 0x270   : > { %v649_v38 = vpop.f32.mrf.mxu0 }
 0x271   : > { %714 = vst [vmem:[%s1107_s6 + $0x10] sm:$0xff] %v658_v37  ;;  %v650_v40 = vadd.f32 %v649_v38, %v566_v35 }
 0x272   : > { %v930_v39 = vpop.f32.mrf.mxu0 }
 0x273   : > { %712 = vst [vmem:[%s1107_s6] sm:$0xff] %v650_v40  ;;  %v661_v41 = vadd.f32 %v930_v39, %v566_v35 }
 0x274   : > { %v652_v42 = vpop.f32.mrf.mxu0 }
 0x275   : > { %715 = vst [vmem:[%s1107_s6 + $0x18] sm:$0xff] %v661_v41  ;;  %v653_v43 = vadd.f32 %v652_v42, %v566_v35 }
 0x276   : > { %v933_v44 = vpop.f32.mrf.mxu0 }
 0x277   : > { %713 = vst [vmem:[%s1107_s6 + $0x8] sm:$0xff] %v653_v43  ;;  %v674_v45 = vadd.f32 %v933_v44, %v566_v35 }
 0x278   : > { %v665_v46 = vpop.f32.mrf.mxu0 }
 0x279   : > { %718 = vst [vmem:[%s1107_s6 + $0x30] sm:$0xff] %v674_v45  ;;  %v666_v47 = vadd.f32 %v665_v46, %v566_v35 }
 0x27a   : > { %v934_v48 = vpop.f32.mrf.mxu0 }
 0x27b   : > { %716 = vst [vmem:[%s1107_s6 + $0x20] sm:$0xff] %v666_v47  ;;  %v677_v49 = vadd.f32 %v934_v48, %v566_v35 }
 0x27c   : > { %v668_v50 = vpop.f32.mrf.mxu0 }
 0x27d   : > { %719 = vst [vmem:[%s1107_s6 + $0x38] sm:$0xff] %v677_v49  ;;  %v669_v51 = vadd.f32 %v668_v50, %v566_v35 }
 0x27e   : > { %v937_v52 = vpop.f32.mrf.mxu0 }
 0x27f   : > { %717 = vst [vmem:[%s1107_s6 + $0x28] sm:$0xff] %v669_v51  ;;  %v690_v53 = vadd.f32 %v937_v52, %v566_v35 }
 0x280   : > { %v681_v54 = vpop.f32.mrf.mxu0 }
 0x281   : > { %722 = vst [vmem:[%s1107_s6 + $0x50] sm:$0xff] %v690_v53  ;;  %v682_v55 = vadd.f32 %v681_v54, %v566_v35 }
 0x282   : > { %v938_v56 = vpop.f32.mrf.mxu0 }
 0x283   : > { %720 = vst [vmem:[%s1107_s6 + $0x40] sm:$0xff] %v682_v55  ;;  %v693_v57 = vadd.f32 %v938_v56, %v566_v35 }
 0x284   : > { %v684_v58 = vpop.f32.mrf.mxu0 }
 0x285   : > { %723 = vst [vmem:[%s1107_s6 + $0x58] sm:$0xff] %v693_v57  ;;  %v685_v59 = vadd.f32 %v684_v58, %v566_v35 }
 0x286   : > { %v941_v60 = vpop.f32.mrf.mxu0 }
 0x287   : > { %721 = vst [vmem:[%s1107_s6 + $0x48] sm:$0xff] %v685_v59  ;;  %v706_v61 = vadd.f32 %v941_v60, %v566_v35 }
 0x288   : > { %v697_v62 = vpop.f32.mrf.mxu0 }
 0x289   : > { %726 = vst [vmem:[%s1107_s6 + $0x70] sm:$0xff] %v706_v61  ;;  %v698_v63 = vadd.f32 %v697_v62, %v566_v35 }
 0x28a   : > { %v942_v0 = vpop.f32.mrf.mxu0 }
 0x28b   : > { %724 = vst [vmem:[%s1107_s6 + $0x60] sm:$0xff] %v698_v63  ;;  %v709_v1 = vadd.f32 %v942_v0, %v566_v35 }
 0x28c   : > { %v700_v2 = vpop.f32.mrf.mxu0 }
 0x28d   : > { %727 = vst [vmem:[%s1107_s6 + $0x78] sm:$0xff] %v709_v1  ;;  %v701_v3 = vadd.f32 %v700_v2, %v566_v35 }
 0x28f   : > { %725 = vst [vmem:[%s1107_s6 + $0x68] sm:$0xff] %v701_v3 }
 0x290 PF: > { %s13_s12 = sadd.s32 1, %s974_s12  }
 0x291   : > { %p10_p4 = scmp.ge.s32.totalorder %s13_s12, 4  }
 0x293   :  { %12 = sbr.rel (!%p10_p4) target bundleno = 1 (0x1), region = 62 }

</bundles_post_ra>
